<compile_context>
chip_gen: v7x
topology: tpu7x:2x2x1
jax: 0.10.0
libtpu: 0.0.40
codegen_flags: <defaults>
</compile_context>

<pallas_src>
import functools

import jax
import jax.numpy as jnp
from jax.experimental import pallas as pl
from jax.experimental.pallas import tpu as pltpu


# --------------------------------------------------------------------------- #
# Small helpers
# --------------------------------------------------------------------------- #
def _round_up(x, m):
    return ((x + m - 1) // m) * m


def _cdiv(a, b):
    return (a + b - 1) // b


def _vmem_cap_bytes():
    """Per-core VMEM capacity minus headroom (portable v5e/v6e/v7x)."""
    try:
        cap = int(pltpu.get_tpu_info().vmem_capacity_bytes)
        if cap < (16 << 20):
            cap = 64 << 20
    except Exception:
        cap = 64 << 20  # conservative: v7x per-TensorCore VMEM
    return max(cap - (8 << 20), 16 << 20)


def _sublane_multiple(dtype):
    # f32 -> 8 sublanes / vreg, bf16 -> 16, int8/fp8 -> 32.
    return 8 * max(1, 4 // jnp.dtype(dtype).itemsize)


# One-time eager probe: is BlockSpec(pipeline_mode=pl.Buffered(1)) supported
# end-to-end (construction + lowering + run)?  Guarantees a clean fallback.
_BUFFERED_OK = None


def _buffered_supported():
    global _BUFFERED_OK
    if _BUFFERED_OK is None:
        try:
            def _probe_kernel(x_ref, o_ref):
                o_ref[...] = x_ref[...] + 1.0

            spec = pl.BlockSpec((8, 128), lambda i: (0, 0),
                                pipeline_mode=pl.Buffered(1))
            out = pl.pallas_call(
                _probe_kernel,
                out_shape=jax.ShapeDtypeStruct((8, 128), jnp.float32),
                grid=(1,),
                in_specs=[spec],
                out_specs=pl.BlockSpec((8, 128), lambda i: (0, 0)),
            )(jnp.zeros((8, 128), jnp.float32))
            jax.block_until_ready(out)
            _BUFFERED_OK = True
        except Exception:
            _BUFFERED_OK = False
    return _BUFFERED_OK


def _resident_spec(shape, use_buffered):
    """BlockSpec for an operand whose block is identical for every grid step.
    With pl.Buffered(1) it gets a single VMEM buffer (no double-buffering)."""
    index_map = lambda *idx: tuple(0 for _ in shape)
    if use_buffered:
        return pl.BlockSpec(shape, index_map, pipeline_mode=pl.Buffered(1))
    return pl.BlockSpec(shape, index_map)


# --------------------------------------------------------------------------- #
# Kernels
# --------------------------------------------------------------------------- #
def _mlp_kernel_resident(x_ref, w1_ref, b1_ref, w2_ref, b2_ref, o_ref):
    # layer 1: x @ W1 + b1, ReLU  (f32 accumulation on the MXU, ReLU on VPU)
    h = jnp.dot(x_ref[...], w1_ref[...], preferred_element_type=jnp.float32)
    h = jnp.maximum(h + b1_ref[...], 0.0)
    # layer 2: h @ W2 + b2
    y = jnp.dot(h.astype(w2_ref.dtype), w2_ref[...],
                preferred_element_type=jnp.float32)
    o_ref[...] = (y + b2_ref[...]).astype(o_ref.dtype)


def _mlp_kernel_htiled(x_ref, w1_ref, b1_ref, w2_ref, b2_ref, o_ref, acc_ref):
    # Grid = (batch tiles, hidden chunks); the hidden-chunk axis is a
    # reduction: y = sum_k ReLU(x @ W1[:, k] + b1[k]) @ W2[k, :]  (+ b2).
    k = pl.program_id(1)

    @pl.when(k == 0)
    def _init():
        acc_ref[...] = jnp.zeros_like(acc_ref)

    h = jnp.dot(x_ref[...], w1_ref[...], preferred_element_type=jnp.float32)
    h = jnp.maximum(h + b1_ref[...], 0.0)          # ReLU is elementwise
    acc_ref[...] += jnp.dot(h.astype(w2_ref.dtype), w2_ref[...],
                            preferred_element_type=jnp.float32)

    @pl.when(k == pl.num_programs(1) - 1)
    def _finish():
        o_ref[...] = (acc_ref[...] + b2_ref[...]).astype(o_ref.dtype)


# --------------------------------------------------------------------------- #
# Jitted forward over pre-padded parameters
# --------------------------------------------------------------------------- #
@functools.partial(
    jax.jit,
    static_argnames=("out_features", "batch_tile", "h_tile", "use_buffered"))
def _fp_mlp_forward_padded(x, w1p, b1p, w2p, b2p, *, out_features, batch_tile,
                           h_tile, use_buffered):
    """x: [B, In].  Padded params: w1p [In_p,H_p], b1p [1,H_p] (f32),
    w2p [H_p,Out_p], b2p [1,Out_p] (f32).  h_tile == 0 -> whole-weight-resident
    kernel; h_tile > 0 -> hidden dim processed in chunks with an accumulator."""
    B, In = x.shape
    In_p, H_p = w1p.shape
    Out_p = w2p.shape[1]
    compute_dtype = w1p.dtype
    out_dtype = x.dtype
    isz = jnp.dtype(compute_dtype).itemsize
    osz = jnp.dtype(out_dtype).itemsize

    # ---- batch tile: balance tiles so the last one is not mostly padding;
    #      keep it a multiple of the packed sublane count for compute_dtype.
    sub = _sublane_multiple(compute_dtype)
    n_tiles = max(1, _cdiv(B, max(batch_tile, sub)))
    TB = _round_up(_cdiv(B, n_tiles), sub)
    n_b = _cdiv(B, TB)
    B_p = n_b * TB

    # ---- pad / cast x only when actually needed (skip the HBM copy otherwise)
    xc = x.astype(compute_dtype)
    if B_p != B or In_p != In:
        xp = jnp.zeros((B_p, In_p), compute_dtype).at[:B, :In].set(xc)
    else:
        xp = xc

    cap = _vmem_cap_bytes()

    if h_tile == 0:
        # ---------------- whole-weight-resident path ----------------
        grid = (n_b,)
        in_specs = [
            pl.BlockSpec((TB, In_p), lambda i: (i, 0)),      # x: batch-tiled
            _resident_spec((In_p, H_p), use_buffered),       # W1 resident
            _resident_spec((1, H_p), use_buffered),          # b1 resident
            _resident_spec((H_p, Out_p), use_buffered),      # W2 resident
            _resident_spec((1, Out_p), use_buffered),        # b2 resident
        ]
        out_specs = pl.BlockSpec((TB, Out_p), lambda i: (i, 0))
        kernel = _mlp_kernel_resident
        scratch_shapes = []
        dim_sem = ("parallel",)
        w_buf = 1 if use_buffered else 2
        vmem_need = (
            2 * TB * In_p * isz                              # x tile (x2 bufs)
            + 2 * TB * Out_p * osz                           # out tile (x2)
            + w_buf * (In_p * H_p + H_p * Out_p) * isz       # weights
            + w_buf * (H_p + Out_p) * 4                      # biases (f32)
            + TB * H_p * 4 + TB * Out_p * 4                  # f32 intermediates
        )
    else:
        # ---------------- hidden-dim tiled path ----------------
        TH = h_tile
        n_k = H_p // TH
        grid = (n_b, n_k)
        in_specs = [
            pl.BlockSpec((TB, In_p), lambda i, k: (i, 0)),   # x: const over k
            pl.BlockSpec((In_p, TH), lambda i, k: (0, k)),   # W1 column chunk
            pl.BlockSpec((1, TH), lambda i, k: (0, k)),      # b1 chunk
            pl.BlockSpec((TH, Out_p), lambda i, k: (k, 0)),  # W2 row chunk
            _resident_spec((1, Out_p), use_buffered),        # b2 resident
        ]
        out_specs = pl.BlockSpec((TB, Out_p), lambda i, k: (i, 0))
        kernel = _mlp_kernel_htiled
        scratch_shapes = [pltpu.VMEM((TB, Out_p), jnp.float32)]
        dim_sem = ("parallel", "arbitrary")
        vmem_need = (
            2 * TB * In_p * isz + 2 * TB * Out_p * osz
            + 2 * (In_p * TH + TH * Out_p) * isz             # W chunks (x2)
            + 2 * (TH + Out_p) * 4                           # bias chunks
            + TB * Out_p * 4                                 # accumulator
            + TB * TH * 4 + TB * Out_p * 4                   # f32 intermediates
        )

    vmem_limit = min(max(int(vmem_need * 1.25) + (2 << 20), 16 << 20), cap)

    cost = pl.CostEstimate(
        flops=2 * B_p * (In_p * H_p + H_p * Out_p),
        transcendentals=0,
        bytes_accessed=(B_p * In_p * isz + In_p * H_p * isz + H_p * Out_p * isz
                        + (H_p + Out_p) * 4 + B_p * Out_p * osz),
    )

    out_p = pl.pallas_call(
        kernel,
        out_shape=jax.ShapeDtypeStruct((B_p, Out_p), out_dtype),
        grid_spec=pltpu.PrefetchScalarGridSpec(
            num_scalar_prefetch=0,
            grid=grid,
            in_specs=in_specs,
            out_specs=out_specs,
            scratch_shapes=scratch_shapes,
        ),
        compiler_params=pltpu.CompilerParams(
            dimension_semantics=dim_sem,      # batch axis shards across TCs
            vmem_limit_bytes=vmem_limit,
        ),
        cost_estimate=cost,
    )(xp, w1p, b1p, w2p, b2p)

    if B_p != B or Out_p != out_features:
        out_p = out_p[:B, :out_features]
    return out_p


# --------------------------------------------------------------------------- #
# User-facing wrapper: pads/casts weights ONCE, reused across calls
# --------------------------------------------------------------------------- #
class FPMLPPallas:
    """Fused Linear -> ReLU -> Linear (same math as the PyTorch FPMLP)."""

    def __init__(self, w1, b1, w2, b2, *, compute_dtype=None, batch_tile=512,
                 h_tile=None):
        # w1: [In, H], b1: [H] or [1,H]; w2: [H, Out], b2: [Out] or [1,Out]
        In, H = w1.shape
        Out = w2.shape[1]
        self.in_features, self.hidden_features, self.out_features = In, H, Out
        cdt = jnp.dtype(compute_dtype if compute_dtype is not None else w1.dtype)
        self.compute_dtype = cdt
        self.batch_tile = int(batch_tile)
        self.use_buffered = _buffered_supported()

        isz = cdt.itemsize
        cap = _vmem_cap_bytes()
        In_p = _round_up(In, 128)
        H_p = _round_up(H, 128)
        Out_p = _round_up(Out, 128)

        if h_tile is None:
            # Whole-weight residency when it comfortably fits VMEM; otherwise
            # tile the hidden dimension (mandatory on v7x / wide layers).
            tb = _round_up(self.batch_tile, _sublane_multiple(cdt))
            w_buf = 1 if self.use_buffered else 2
            resident_need = (w_buf * (In_p * H_p + H_p * Out_p) * isz
                             + 2 * tb * (In_p + Out_p) * isz
                             + tb * (H_p + Out_p) * 4)
            if resident_need <= int(0.7 * cap):
                h_tile = 0
            else:
                budget = int(0.5 * cap) - (2 * tb * (In_p + Out_p) * isz
                                           + 2 * tb * Out_p * 4)
                denom = 2 * (In_p + Out_p) * isz + tb * 4
                th = max(budget // max(denom, 1), 128)
                h_tile = max(128, (th // 128) * 128)
        if h_tile:
            n_k = max(1, _cdiv(H_p, h_tile))
            h_tile = _round_up(_cdiv(H_p, n_k), 128)
            H_p = h_tile * n_k
            if h_tile >= H_p:
                h_tile = 0        # a single chunk == resident path
        self.h_tile = int(h_tile)

        f32 = jnp.float32
        self.w1p = jnp.zeros((In_p, H_p), cdt).at[:In, :H].set(w1.astype(cdt))
        self.b1p = jnp.zeros((1, H_p), f32).at[:, :H].set(
            jnp.asarray(b1, f32).reshape(1, H))
        self.w2p = jnp.zeros((H_p, Out_p), cdt).at[:H, :Out].set(w2.astype(cdt))
        self.b2p = jnp.zeros((1, Out_p), f32).at[:, :Out].set(
            jnp.asarray(b2, f32).reshape(1, Out))

    def __call__(self, x):
        return _fp_mlp_forward_padded(
            x, self.w1p, self.b1p, self.w2p, self.b2p,
            out_features=self.out_features,
            batch_tile=self.batch_tile,
            h_tile=self.h_tile,
            use_buffered=self.use_buffered)


def fp_mlp_forward(x, w1, b1, w2, b2, **kwargs):
    """One-shot convenience wrapper (prefer FPMLPPallas to reuse padded
    weights across calls)."""
    return FPMLPPallas(w1, b1, w2, b2, **kwargs)(x)


def init_fp_mlp_params(key, input_size, hidden_size, output_size,
                       dtype=jnp.float32):
    """Deterministic init matching nn.Linear's U(-1/sqrt(fan_in), 1/sqrt(fan_in)).
    Weights stored pre-transposed: [in_features, out_features]."""
    k1, k2, k3, k4 = jax.random.split(key, 4)
    bound1 = 1.0 / jnp.sqrt(jnp.array(input_size, dtype))
    bound2 = 1.0 / jnp.sqrt(jnp.array(hidden_size, dtype))
    w1 = jax.random.uniform(k1, (input_size, hidden_size), dtype,
                            minval=-bound1, maxval=bound1)
    b1 = jax.random.uniform(k2, (1, hidden_size), dtype,
                            minval=-bound1, maxval=bound1)
    w2 = jax.random.uniform(k3, (hidden_size, output_size), dtype,
                            minval=-bound2, maxval=bound2)
    b2 = jax.random.uniform(k4, (1, output_size), dtype,
                            minval=-bound2, maxval=bound2)
    return w1, b1, w2, b2


if __name__ == "__main__":
    key = jax.random.PRNGKey(0)

    # --- Small, MLP-consistent shapes: batch=8, input=32, hidden=64, out=16 --
    batch, input_size, hidden_size, output_size = 8, 32, 64, 16
    kx, kp, kx2, kp2 = jax.random.split(key, 4)
    x = jax.random.normal(kx, (batch, input_size), jnp.float32)
    w1, b1, w2, b2 = init_fp_mlp_params(kp, input_size, hidden_size,
                                        output_size)

    mlp = FPMLPPallas(w1, b1, w2, b2)          # weights padded/cast once
    out = jax.block_until_ready(mlp(x))
    ref = jnp.maximum(x @ w1 + b1, 0.0) @ w2 + b2
    assert out.shape == (batch, output_size)
    assert jnp.allclose(out, ref, atol=1e-5, rtol=1e-5)

    # --- Multi-tile batch: balanced batch tiles (300 -> 3 x 104 on f32),
    #     weights reused from the cached padded copies. ---------------------
    big_batch = 300
    x2 = jax.random.normal(kx2, (big_batch, input_size), jnp.float32)
    mlp_small_tile = FPMLPPallas(w1, b1, w2, b2, batch_tile=128)
    out2 = jax.block_until_ready(mlp_small_tile(x2))
    ref2 = jnp.maximum(x2 @ w1 + b1, 0.0) @ w2 + b2
    assert out2.shape == (big_batch, output_size)
    assert jnp.allclose(out2, ref2, atol=1e-4, rtol=1e-4)

    # --- bf16 operands / f32 accumulation (MXU-peak path on v6e/v7x). -------
    mlp_bf16 = FPMLPPallas(w1, b1, w2, b2, compute_dtype=jnp.bfloat16,
                           batch_tile=128)
    out3 = jax.block_until_ready(mlp_bf16(x2))
    assert out3.shape == (big_batch, output_size)
    assert jnp.allclose(out3.astype(jnp.float32), ref2, atol=5e-2, rtol=5e-2)

    # --- Forced hidden-dim tiled path (accumulator kernel), hidden=256 ------
    w1b, b1b, w2b, b2b = init_fp_mlp_params(kp2, input_size, 256, output_size)
    mlp_tiled = FPMLPPallas(w1b, b1b, w2b, b2b, h_tile=128)
    x4 = jax.random.normal(kx, (64, input_size), jnp.float32)
    out4 = jax.block_until_ready(mlp_tiled(x4))
    ref4 = jnp.maximum(x4 @ w1b + b1b, 0.0) @ w2b + b2b
    assert out4.shape == (64, output_size)
    assert jnp.allclose(out4, ref4, atol=1e-4, rtol=1e-4)

    print("KERNEL_OK")
</pallas_src>

<mosaic_0001>
module attributes {stable_mosaic.version = 11 : i64} {
  func.func @_probe_kernel(%arg0: i32, %arg1: memref<8x128xf32, #tpu.memory_space<vmem>>, %arg2: memref<8x128xf32, #tpu.memory_space<vmem>>) attributes {dimension_semantics = [#tpu.dimension_semantics<arbitrary>], iteration_bounds = array<i64: 1>, scalar_prefetch = 0 : i64, scratch_operands = 0 : i64, tpu.core_type = #tpu.core_type<tc>, window_params = [{pipeline_mode = #tpu.pipeline_mode<synchronous>, transform_indices = @transform_0, window_bounds = array<i64: 8, 128>}, {pipeline_mode = #tpu.pipeline_mode<synchronous>, transform_indices = @transform_1, window_bounds = array<i64: 8, 128>}]} {
    %c0 = arith.constant 0 : index
    %c0_0 = arith.constant 0 : index
    %0 = vector.load %arg1[%c0, %c0_0] : memref<8x128xf32, #tpu.memory_space<vmem>>, vector<8x128xf32>
    %cst = arith.constant 1.000000e+00 : f32
    %1 = vector.broadcast %cst : f32 to vector<8x128xf32>
    %2 = arith.addf %0, %1 : vector<8x128xf32>
    %c0_1 = arith.constant 0 : index
    %c0_2 = arith.constant 0 : index
    %3 = vector.load %arg2[%c0_1, %c0_2] : memref<8x128xf32, #tpu.memory_space<vmem>>, vector<8x128xf32>
    tpu.vector_store %arg2[%c0_1, %c0_2], %2 {strides = array<i32>} : memref<8x128xf32, #tpu.memory_space<vmem>>, vector<8x128xf32>,
    return
  }
  func.func @transform_0(%arg0: i32) -> (i32, i32) {
    %c0_i32 = arith.constant 0 : i32
    %c0_i32_0 = arith.constant 0 : i32
    %c0_i32_1 = arith.constant 0 : i32
    return %c0_i32, %c0_i32_0 : i32, i32
  }
  func.func @transform_1(%arg0: i32) -> (i32, i32) {
    %c0_i32 = arith.constant 0 : i32
    %c0_i32_0 = arith.constant 0 : i32
    %c0_i32_1 = arith.constant 0 : i32
    return %c0_i32, %c0_i32_0 : i32, i32
  }
}

module attributes {stable_mosaic.version = 11 : i64} {
  func.func @_mlp_kernel_resident(%arg0: i32, %arg1: memref<8x128xf32, #tpu.memory_space<vmem>>, %arg2: memref<128x128xf32, #tpu.memory_space<vmem>>, %arg3: memref<1x128xf32, #tpu.memory_space<vmem>>, %arg4: memref<128x128xf32, #tpu.memory_space<vmem>>, %arg5: memref<1x128xf32, #tpu.memory_space<vmem>>, %arg6: memref<8x128xf32, #tpu.memory_space<vmem>>) attributes {dimension_semantics = [#tpu.dimension_semantics<parallel>], iteration_bounds = array<i64: 1>, scalar_prefetch = 0 : i64, scratch_operands = 0 : i64, tpu.core_type = #tpu.core_type<tc>, window_params = [{transform_indices = @transform_0, window_bounds = array<i64: 8, 128>}, {pipeline_mode = #tpu.pipeline_mode<synchronous>, transform_indices = @transform_1, window_bounds = array<i64: 128, 128>}, {pipeline_mode = #tpu.pipeline_mode<synchronous>, transform_indices = @transform_2, window_bounds = array<i64: 1, 128>}, {pipeline_mode = #tpu.pipeline_mode<synchronous>, transform_indices = @transform_3, window_bounds = array<i64: 128, 128>}, {pipeline_mode = #tpu.pipeline_mode<synchronous>, transform_indices = @transform_4, window_bounds = array<i64: 1, 128>}, {transform_indices = @transform_5, window_bounds = array<i64: 8, 128>}]} {
    %c0 = arith.constant 0 : index
    %c0_0 = arith.constant 0 : index
    %0 = vector.load %arg1[%c0, %c0_0] : memref<8x128xf32, #tpu.memory_space<vmem>>, vector<8x128xf32>
    %c0_1 = arith.constant 0 : index
    %c0_2 = arith.constant 0 : index
    %1 = vector.load %arg2[%c0_1, %c0_2] : memref<128x128xf32, #tpu.memory_space<vmem>>, vector<128x128xf32>
    %cst = arith.constant dense<0.000000e+00> : vector<8x128xf32>
    %2 = tpu.matmul %0, %1, %cst {dimension_numbers = #tpu.dot_dimension_numbers<[1], [0], [0], [1], [0, 0, 1, 1], [], []>} : vector<8x128xf32>, vector<128x128xf32>, vector<8x128xf32> -> vector<8x128xf32>
    %c0_3 = arith.constant 0 : index
    %c0_4 = arith.constant 0 : index
    %3 = vector.load %arg3[%c0_3, %c0_4] : memref<1x128xf32, #tpu.memory_space<vmem>>, vector<1x128xf32>
    %4 = vector.broadcast %3 : vector<1x128xf32> to vector<8x128xf32>
    %5 = arith.addf %2, %4 : vector<8x128xf32>
    %cst_5 = arith.constant 0.000000e+00 : f32
    %6 = vector.broadcast %cst_5 : f32 to vector<8x128xf32>
    %7 = arith.maximumf %5, %6 : vector<8x128xf32>
    %c0_6 = arith.constant 0 : index
    %c0_7 = arith.constant 0 : index
    %8 = vector.load %arg4[%c0_6, %c0_7] : memref<128x128xf32, #tpu.memory_space<vmem>>, vector<128x128xf32>
    %cst_8 = arith.constant dense<0.000000e+00> : vector<8x128xf32>
    %9 = tpu.matmul %7, %8, %cst_8 {dimension_numbers = #tpu.dot_dimension_numbers<[1], [0], [0], [1], [0, 0, 1, 1], [], []>} : vector<8x128xf32>, vector<128x128xf32>, vector<8x128xf32> -> vector<8x128xf32>
    %c0_9 = arith.constant 0 : index
    %c0_10 = arith.constant 0 : index
    %10 = vector.load %arg5[%c0_9, %c0_10] : memref<1x128xf32, #tpu.memory_space<vmem>>, vector<1x128xf32>
    %11 = vector.broadcast %10 : vector<1x128xf32> to vector<8x128xf32>
    %12 = arith.addf %9, %11 : vector<8x128xf32>
    %c0_11 = arith.constant 0 : index
    %c0_12 = arith.constant 0 : index
    %13 = vector.load %arg6[%c0_11, %c0_12] : memref<8x128xf32, #tpu.memory_space<vmem>>, vector<8x128xf32>
    tpu.vector_store %arg6[%c0_11, %c0_12], %12 {strides = array<i32>} : memref<8x128xf32, #tpu.memory_space<vmem>>, vector<8x128xf32>,
    return
  }
  func.func @transform_0(%arg0: i32) -> (i32, i32) {
    %c0_i32 = arith.constant 0 : i32
    %c0_i32_0 = arith.constant 0 : i32
    return %arg0, %c0_i32 : i32, i32
  }
  func.func @transform_1(%arg0: i32) -> (i32, i32) {
    %c0_i32 = arith.constant 0 : i32
    %c0_i32_0 = arith.constant 0 : i32
    %c0_i32_1 = arith.constant 0 : i32
    return %c0_i32, %c0_i32_0 : i32, i32
  }
  func.func @transform_2(%arg0: i32) -> (i32, i32) {
    %c0_i32 = arith.constant 0 : i32
    %c0_i32_0 = arith.constant 0 : i32
    %c0_i32_1 = arith.constant 0 : i32
    return %c0_i32, %c0_i32_0 : i32, i32
  }
  func.func @transform_3(%arg0: i32) -> (i32, i32) {
    %c0_i32 = arith.constant 0 : i32
    %c0_i32_0 = arith.constant 0 : i32
    %c0_i32_1 = arith.constant 0 : i32
    return %c0_i32, %c0_i32_0 : i32, i32
  }
  func.func @transform_4(%arg0: i32) -> (i32, i32) {
    %c0_i32 = arith.constant 0 : i32
    %c0_i32_0 = arith.constant 0 : i32
    %c0_i32_1 = arith.constant 0 : i32
    return %c0_i32, %c0_i32_0 : i32, i32
  }
  func.func @transform_5(%arg0: i32) -> (i32, i32) {
    %c0_i32 = arith.constant 0 : i32
    %c0_i32_0 = arith.constant 0 : i32
    return %arg0, %c0_i32 : i32, i32
  }
}

</mosaic_0001>

<bundles_post_ra>
// kernel: tpu_custom_call.1
= control target key start
LH: loop header
LB: loop body
LE: loop exit
PB: predicated region body
PF: predicated region fallthrough
CT: control target
= control target key end

     0   :  { %6 = vsyncpa [#allocation3], 0  ;;  %s125_s0 = inlined_call_operand.hbm [shape: f32[8,128], index: 0, kind: input, shape index: {}]   ;;  %s126_s1 = inlined_call_operand.hbm [shape: f32[8,128], index: 1, kind: output, shape index: {}]  }
   0x1   :  { %7 = vsyncpa [#allocation4], 0  ;;  %s89_s6 = smov [#allocation2]   ;;  %s41_s10 = scalar_lea.hbm %s125_s0, 128 }
   0x2   :  { %s14_s7 = sshll.u32 %s89_s6, 4  ;;  %p42_p0 = scmp.ne.s32.totalorder %s125_s0, %s41_s10  ;;  %s15_s7 = int_to_ptr.vmem [resolvable:$true] %s14_s7 }
   0x3   :  { %p45_p1 = scmp.lt.u32.totalorder %s41_s10, %s125_s0 }
   0x5   :  { %p47_p2 = pnand %p45_p1, %p42_p0 }
   0x7   :  { %50 = shalt.err (!%p47_p2)
}
   0x8   :  { %s51_s15 = scalar_lea.vmem %s15_s7, 128  ;;  %p56_p4 = scmp.lt.s32.totalorder %s15_s7, %s15_s7 }
   0x9   :  { %p52_p3 = scmp.ne.s32.totalorder %s15_s7, %s51_s15  ;;  %p57_p5 = scmp.lt.s32.totalorder %s51_s15, %s51_s15 }
   0xb   :  { %p58_p6 = por %p57_p5, %p56_p4 }
   0xd   :  { %p59_p7 = pnand %p58_p6, %p52_p3 }
   0xf   :  { %62 = shalt.err (!%p59_p7)
}
  0x10   :  { %17 = dma.hbm_to_vmem [thread:$0]  %s125_s0, 128, %s15_s7, [#allocation3]  }
  0x11   :  { %85 = dma.done.wait [#allocation3], 128  }
  0x12   :  { %86 = vsyncadd [#allocation3], 4294967168  ;;  %s90_s18 = smov [#allocation5]   ;;  %v21_v0 = vld [vmem:[#allocation2] sm:$0xff] }
  0x13   :  { %s30_s19 = sshll.u32 %s90_s18, 4  ;;  %v22_v1 = vadd.f32 1.0, %v21_v0  ;;  %s31_s19 = int_to_ptr.vmem [resolvable:$true] %s30_s19 }
  0x14   :  { %s63_s20 = scalar_lea.vmem %s31_s19, 128  ;;  %p68_p9 = scmp.lt.s32.totalorder %s31_s19, %s31_s19 }
  0x15   :  { %23 = vst [vmem:[#allocation5] sm:$0xff] %v22_v1  ;;  %p64_p8 = scmp.ne.s32.totalorder %s31_s19, %s63_s20  ;;  %p69_p10 = scmp.lt.s32.totalorder %s63_s20, %s63_s20 }
  0x17   :  { %p70_p11 = por %p69_p10, %p68_p9 }
  0x19   :  { %p71_p12 = pnand %p70_p11, %p64_p8 }
  0x1b   :  { %74 = shalt.err (!%p71_p12)
}
  0x1c   :  { %s75_s23 = scalar_lea.hbm %s126_s1, 128 }
  0x1d   :  { %p76_p13 = scmp.ne.s32.totalorder %s126_s1, %s75_s23  ;;  %p79_p0 = scmp.lt.u32.totalorder %s75_s23, %s126_s1 }
  0x1f   :  { %p81_p1 = pnand %p79_p0, %p76_p13 }
  0x21   :  { %84 = shalt.err (!%p81_p1)
}
  0x22   :  { %33 = dma.vmem_to_hbm [thread:$0]  %s31_s19, 128, %s126_s1, [#allocation4]  }
  0x23   :  { %87 = dma.done.wait [#allocation4], 128  }
  0x24   :  { %88 = vsyncadd [#allocation4], 4294967168 }
  0x25   :  { %37 = vsyncpa [#allocation3], 1 }
  0x26   :  { %38 = vsyncpa [#allocation4], 1 }

// kernel: _fp_mlp_forward_padded.1
= control target key start
LH: loop header
LB: loop body
LE: loop exit
PB: predicated region body
PF: predicated region fallthrough
CT: control target
= control target key end

     0   :  { %10 = vsyncpa [#allocation3], 0  ;;  %s587_s0 = inlined_call_operand.vmem [shape: f32[8,128], index: 0, kind: input, shape index: {}]   ;;  %s588_s1 = inlined_call_operand.hbm [shape: f32[128,128], index: 1, kind: input, shape index: {}]   ;;  %s589_s2 = inlined_call_operand.vmem [shape: f32[1,128], index: 2, kind: input, shape index: {}]   ;;  %s590_s3 = inlined_call_operand.hbm [shape: f32[128,128], index: 3, kind: input, shape index: {}]   ;;  %s591_s4 = inlined_call_operand.vmem [shape: f32[1,128], index: 4, kind: input, shape index: {}]   ;;  %s592_s5 = inlined_call_operand.hbm [shape: f32[8,128], index: 5, kind: output, shape index: {}]  }
   0x1   :  { %11 = vsyncpa [#allocation6], 0 }
   0x2   :  { %12 = vsyncpa [#allocation4], 0  ;;  %s488_s18 = smov [#allocation2]   ;;  %s416_s22 = scalar_lea.hbm %s588_s1, 2048 }
   0x3   :  { %s20_s19 = sshll.u32 %s488_s18, 4  ;;  %p417_p0 = scmp.ne.s32.totalorder %s588_s1, %s416_s22  ;;  %s21_s19 = int_to_ptr.vmem [resolvable:$true] %s20_s19 }
   0x4   :  { %p420_p1 = scmp.lt.u32.totalorder %s416_s22, %s588_s1 }
   0x6   :  { %p422_p2 = pnand %p420_p1, %p417_p0 }
   0x8   :  { %425 = shalt.err (!%p422_p2)
}
   0x9   :  { %s426_s27 = scalar_lea.vmem %s21_s19, 2048  ;;  %p431_p4 = scmp.lt.s32.totalorder %s21_s19, %s21_s19 }
   0xa   :  { %p427_p3 = scmp.ne.s32.totalorder %s21_s19, %s426_s27  ;;  %p432_p5 = scmp.lt.s32.totalorder %s426_s27, %s426_s27 }
   0xc   :  { %p433_p6 = por %p432_p5, %p431_p4 }
   0xe   :  { %p434_p7 = pnand %p433_p6, %p427_p3 }
  0x10   :  { %437 = shalt.err (!%p434_p7)
}
  0x11   :  { %s489_s28 = smov 128   ;;  %s490_s29 = smov 8  }
  0x12   :  { %26 = dma.hbm_to_vmem [thread:$0]  %s588_s1, 2048, %s21_s19, [#allocation3], %s489_s28, %s489_s28, %s490_s29  }
  0x13   :  { %s491_s7 = smov [#allocation5]   ;;  %s438_s11 = scalar_lea.hbm %s590_s3, 2048 }
  0x14   :  { %s34_s8 = sshll.u32 %s491_s7, 4  ;;  %p439_p8 = scmp.ne.s32.totalorder %s590_s3, %s438_s11  ;;  %s35_s8 = int_to_ptr.vmem [resolvable:$true] %s34_s8 }
  0x15   :  { %p442_p9 = scmp.lt.u32.totalorder %s438_s11, %s590_s3 }
  0x17   :  { %p444_p10 = pnand %p442_p9, %p439_p8 }
  0x19   :  { %447 = shalt.err (!%p444_p10)
}
  0x1a   :  { %s448_s16 = scalar_lea.vmem %s35_s8, 2048  ;;  %p453_p12 = scmp.lt.s32.totalorder %s35_s8, %s35_s8 }
  0x1b   :  { %p449_p11 = scmp.ne.s32.totalorder %s35_s8, %s448_s16  ;;  %p454_p13 = scmp.lt.s32.totalorder %s448_s16, %s448_s16 }
  0x1d   :  { %p455_p0 = por %p454_p13, %p453_p12 }
  0x1f   :  { %p456_p1 = pnand %p455_p0, %p449_p11 }
  0x21   :  { %459 = shalt.err (!%p456_p1)
}
  0x22   :  { %40 = dma.hbm_to_vmem [thread:$0]  %s590_s3, 2048, %s35_s8, [#allocation6], %s489_s28, %s489_s28, %s490_s29  }
  0x23   :  { %482 = dma.done.wait [#allocation3], 2048  }
  0x24   :  { %483 = vsyncadd [#allocation3], 4294965248 }
  0x25   :  { %484 = dma.done.wait [#allocation6], 2048  }
  0x26   :  { %485 = vsyncadd [#allocation6], 4294965248  ;;  %v492_v0 = vmov 0.0|0.0   ;;  %vm493_vm0 = vmmov 0   ;;  %v494_v1 = vmov 0.0   ;;  %v50_v2 = vld [vmem:[#allocation2] sm:$0xff] }
  0x27   :  { %360 = vmatprep.subr.bf16.mxu0 %v492_v0  ;;  %322 = vmatprep.mubr.msk.f32.mxu0 %vm493_vm0, %v494_v1  ;;  %v51_v3 = vld [vmem:[#allocation2 + $0x8] sm:$0xff]  ;;  %v52_v4 = vld [vmem:[#allocation2 + $0x10] sm:$0xff]  ;;  %v53_v6 = vld [vmem:[#allocation2 + $0x18] sm:$0xff] }
  0x28   :  { %384 = vmatprep.subr.bf16.mxu1 %v492_v0  ;;  %357 = vmatprep.mubr.msk.f32.mxu1 %vm493_vm0, %v494_v1  ;;  %v361_v5 = vpack.c.bf16 %v51_v3, %v50_v2  ;;  %v364_v7 = vpack.c.bf16 %v53_v6, %v52_v4  ;;  %v54_v8 = vld [vmem:[#allocation2 + $0x20] sm:$0xff]  ;;  %v55_v9 = vld [vmem:[#allocation2 + $0x28] sm:$0xff]  ;;  %v146_v12 = vld [vmem:[#allocation5 + $0x10] sm:$0xff] }
  0x29   :  { %v144_v10 = vld [vmem:[#allocation5] sm:$0xff]  ;;  %v145_v11 = vld [vmem:[#allocation5 + $0x8] sm:$0xff]  ;;  %v147_v13 = vld [vmem:[#allocation5 + $0x18] sm:$0xff]  ;;  %v367_v14 = vpack.c.bf16 %v55_v9, %v54_v8 }
  0x2a   :  { %362 = vmatpush3.bf16.msra.mxu0 %v361_v5  ;;  %v385_v15 = vpack.c.bf16 %v145_v11, %v144_v10  ;;  %v56_v16 = vld [vmem:[#allocation2 + $0x30] sm:$0xff]  ;;  %v57_v17 = vld [vmem:[#allocation2 + $0x38] sm:$0xff]  ;;  %v388_v18 = vpack.c.bf16 %v147_v13, %v146_v12  ;;  %v148_v19 = vld [vmem:[#allocation5 + $0x20] sm:$0xff] }
  0x2b   :  { %363 = vmatprep.subr.bf16.mxu0 %v492_v0  ;;  %v149_v20 = vld [vmem:[#allocation5 + $0x28] sm:$0xff]  ;;  %v370_v21 = vpack.c.bf16 %v57_v17, %v56_v16  ;;  %v58_v22 = vld [vmem:[#allocation2 + $0x40] sm:$0xff]  ;;  %v150_v25 = vld [vmem:[#allocation5 + $0x30] sm:$0xff] }
  0x2c   :  { %386 = vmatpush3.bf16.msra.mxu1 %v385_v15  ;;  %v59_v23 = vld [vmem:[#allocation2 + $0x48] sm:$0xff]  ;;  %v391_v24 = vpack.c.bf16 %v149_v20, %v148_v19  ;;  %v151_v26 = vld [vmem:[#allocation5 + $0x38] sm:$0xff]  ;;  %v60_v28 = vld [vmem:[#allocation2 + $0x50] sm:$0xff] }
  0x2d   :  { %387 = vmatprep.subr.bf16.mxu1 %v492_v0  ;;  %v373_v27 = vpack.c.bf16 %v59_v23, %v58_v22  ;;  %v61_v29 = vld [vmem:[#allocation2 + $0x58] sm:$0xff]  ;;  %v394_v30 = vpack.c.bf16 %v151_v26, %v150_v25  ;;  %v152_v31 = vld [vmem:[#allocation5 + $0x40] sm:$0xff]  ;;  %v153_v32 = vld [vmem:[#allocation5 + $0x48] sm:$0xff] }
  0x2e   :  { %365 = vmatpush3.bf16.msra.mxu0 %v364_v7  ;;  %v376_v33 = vpack.c.bf16 %v61_v29, %v60_v28  ;;  %v62_v34 = vld [vmem:[#allocation2 + $0x60] sm:$0xff]  ;;  %v63_v35 = vld [vmem:[#allocation2 + $0x68] sm:$0xff]  ;;  %v397_v36 = vpack.c.bf16 %v153_v32, %v152_v31  ;;  %v154_v37 = vld [vmem:[#allocation5 + $0x50] sm:$0xff] }
  0x2f   :  { %366 = vmatprep.subr.bf16.mxu0 %v492_v0  ;;  %v155_v38 = vld [vmem:[#allocation5 + $0x58] sm:$0xff]  ;;  %v379_v39 = vpack.c.bf16 %v63_v35, %v62_v34  ;;  %v64_v40 = vld [vmem:[#allocation2 + $0x70] sm:$0xff]  ;;  %v156_v43 = vld [vmem:[#allocation5 + $0x60] sm:$0xff] }
  0x30   :  { %389 = vmatpush3.bf16.msra.mxu1 %v388_v18  ;;  %v65_v41 = vld [vmem:[#allocation2 + $0x78] sm:$0xff]  ;;  %v400_v42 = vpack.c.bf16 %v155_v38, %v154_v37  ;;  %v157_v44 = vld [vmem:[#allocation5 + $0x68] sm:$0xff]  ;;  %v49_v47 = vld [vmem:[%s587_s0] sm:$0xff]  ;;  %s495_s0 = smov [#allocation7]  }
  0x31   :  { %390 = vmatprep.subr.bf16.mxu1 %v492_v0  ;;  %v382_v45 = vpack.c.bf16 %v65_v41, %v64_v40  ;;  %v403_v46 = vpack.c.bf16 %v157_v44, %v156_v43  ;;  %v158_v48 = vld [vmem:[#allocation5 + $0x70] sm:$0xff]  ;;  %v159_v49 = vld [vmem:[#allocation5 + $0x78] sm:$0xff]  ;;  %v254_v51 = vld [vmem:[%s589_s2] ss:$0 sm:$0xff]  ;;  %s244_s23 = sshll.u32 %s495_s0, 4  ;;  %s245_s23 = int_to_ptr.vmem [resolvable:$true] %s244_s23 }
  0x32   :  { %368 = vmatpush3.bf16.msra.mxu0 %v367_v14  ;;  %v406_v50 = vpack.c.bf16 %v159_v49, %v158_v48  ;;  %v255_v56 = vld [vmem:[%s591_s4] ss:$0 sm:$0xff]  ;;  %s460_s24 = scalar_lea.vmem %s245_s23, 128  ;;  %p465_p3 = scmp.lt.s32.totalorder %s245_s23, %s245_s23 }
  0x33   :  { %369 = vmatprep.subr.bf16.mxu0 %v492_v0  ;;  %p461_p2 = scmp.ne.s32.totalorder %s245_s23, %s460_s24  ;;  %p466_p4 = scmp.lt.s32.totalorder %s460_s24, %s460_s24 }
  0x34   :  { %392 = vmatpush3.bf16.msra.mxu1 %v391_v24 }
  0x35   :  { %393 = vmatprep.subr.bf16.mxu1 %v492_v0  ;;  %p467_p5 = por %p466_p4, %p465_p3 }
  0x36   :  { %371 = vmatpush3.bf16.msra.mxu0 %v370_v21 }
  0x37   :  { %372 = vmatprep.subr.bf16.mxu0 %v492_v0  ;;  %p468_p6 = pnand %p467_p5, %p461_p2 }
  0x38   :  { %395 = vmatpush3.bf16.msra.mxu1 %v394_v30 }
  0x39   :  { %396 = vmatprep.subr.bf16.mxu1 %v492_v0 }
  0x3a   :  { %374 = vmatpush3.bf16.msra.mxu0 %v373_v27 }
  0x3b   :  { %375 = vmatprep.subr.bf16.mxu0 %v492_v0 }
  0x3c   :  { %398 = vmatpush3.bf16.msra.mxu1 %v397_v36 }
  0x3d   :  { %399 = vmatprep.subr.bf16.mxu1 %v492_v0 }
  0x3e   :  { %377 = vmatpush3.bf16.msra.mxu0 %v376_v33 }
  0x3f   :  { %378 = vmatprep.subr.bf16.mxu0 %v492_v0 }
  0x40   :  { %401 = vmatpush3.bf16.msra.mxu1 %v400_v42 }
  0x41   :  { %402 = vmatprep.subr.bf16.mxu1 %v492_v0 }
  0x42   :  { %380 = vmatpush3.bf16.msra.mxu0 %v379_v39 }
  0x43   :  { %381 = vmatprep.subr.bf16.mxu0 %v492_v0 }
  0x44   :  { %404 = vmatpush3.bf16.msra.mxu1 %v403_v46 }
  0x45   :  { %405 = vmatprep.subr.bf16.mxu1 %v492_v0 }
  0x46   :  { %383 = vmatpush3.bf16.msra.mxu0 %v382_v45 }
  0x48   :  { %407 = vmatpush3.bf16.msra.mxu1 %v406_v50 }
  0x49   :  { %323 = vmatmul.mubr.f32.vlgmr.msra.gmra.mrb[0].mxu0 %v49_v47 }
 0x11c   :  { %v139_v52 = vpop.f32.mrb[0].mxu0 }
 0x11d   :  { %v140_v53 = vadd.f32 %v254_v51, %v139_v52  ;;  %v324_v54 = vpop.f32.mrb[1].mxu0 }
 0x11f   :  { %v143_v55 = vmax.f32 %v140_v53, 0.0 }
 0x121   :  { %358 = vmatmul.mubr.f32.vlgmr.msra.gmra.mrb[0].mxu1 %v143_v55 }
 0x1f4   :  { %v233_v57 = vpop.f32.mrb[0].mxu1 }
 0x1f5   :  { %v234_v58 = vadd.f32 %v255_v56, %v233_v57  ;;  %v359_v59 = vpop.f32.mrb[1].mxu1 }
 0x1f7   :  { %237 = vst [vmem:[#allocation7] sm:$0xff] %v234_v58 }
 0x1f8   :  { %471 = shalt.err (!%p468_p6)
}
 0x1f9   :  { %s472_s26 = scalar_lea.hbm %s592_s5, 128 }
 0x1fa   :  { %p473_p7 = scmp.ne.s32.totalorder %s592_s5, %s472_s26  ;;  %p476_p8 = scmp.lt.u32.totalorder %s472_s26, %s592_s5 }
 0x1fc   :  { %p478_p9 = pnand %p476_p8, %p473_p7 }
 0x1fe   :  { %481 = shalt.err (!%p478_p9)
}
 0x1ff   :  { %247 = dma.vmem_to_hbm [thread:$0]  %s245_s23, 128, %s592_s5, [#allocation4]  }
 0x200   :  { %486 = dma.done.wait [#allocation4], 128  }
 0x201   :  { %487 = vsyncadd [#allocation4], 4294967168 }
 0x202   :  { %251 = vsyncpa [#allocation3], 1 }
 0x203   :  { %252 = vsyncpa [#allocation6], 1 }
 0x204   :  { %253 = vsyncpa [#allocation4], 1 }

</bundles_post_ra>
